<compile_context>
chip_gen: v6e
topology: v6e:2x2x1
jax: 0.10.0
libtpu: 0.0.40
codegen_flags: <defaults>
</compile_context>

<pallas_src>
import jax
import jax.numpy as jnp
from jax.experimental import pallas as pl
from jax.experimental.pallas import tpu as pltpu

_LANES = 128
_DEF_ROWS_PER_TILE = 256  # (2, 256, 128) f32 tile = 256 KiB; safe on v5e/v6e/v7x VMEM


def _mse_loss_kernel(ot_ref, loss_ref):
    """Single-shot variant: whole packed rollout in one VMEM block.

    ot_ref  : (2, rows, 128) f32 VMEM  -- [0] = outputs, [1] = targets (zero padded)
    loss_ref: (1, 1)         f32 SMEM  -- scalar loss
    """
    d = ot_ref[0] - ot_ref[1]                       # (rows, 128)  VPU
    sq = d * d
    row = jnp.sum(sq, axis=1, keepdims=True)        # (rows, 1)    lane reduce (XLU)
    tot = jnp.sum(row, axis=0, keepdims=True)       # (1, 1)       sublane reduce
    loss_ref[0, 0] = tot[0, 0]                      # 4-byte scalar SMEM writeback


def _mse_loss_kernel_tiled(ot_ref, loss_ref, acc_ref):
    """Tiled variant for long rollouts: grid over row tiles, resident accumulator.

    ot_ref  : (2, rows_per_tile, 128) f32 VMEM tile
    loss_ref: (1, 1) f32 SMEM (whole output, resident across grid)
    acc_ref : (1, 1) f32 VMEM scratch accumulator
    """
    i = pl.program_id(0)

    @pl.when(i == 0)
    def _():
        acc_ref[...] = jnp.zeros_like(acc_ref)

    d = ot_ref[0] - ot_ref[1]
    sq = d * d
    row = jnp.sum(sq, axis=1, keepdims=True)
    acc_ref[...] += jnp.sum(row, axis=0, keepdims=True)

    @pl.when(i == pl.num_programs(0) - 1)
    def _():
        loss_ref[0, 0] = acc_ref[...][0, 0]


def _pack_dense(v, rows):
    """Zero-pad a 1-D vector to rows*128 and reshape lane+sublane dense (f32)."""
    pad = rows * _LANES - v.shape[0]
    # Cast in the wrapper only because inputs are already f32 here; if inputs were
    # bf16 we would ship bf16 and widen in-kernel (halves input DMA bytes on v5e).
    return jnp.pad(v.astype(jnp.float32), (0, pad)).reshape(rows, _LANES)


def mse_rollout_loss(outputs, targets, *, rows_per_tile=_DEF_ROWS_PER_TILE):
    """loss = sum_i MSELoss(outputs[i], targets[i]) for scalar per-step outputs.

    outputs: (T,) per-step model outputs (stand-in for the abstract forward()'s
             (1,1) outputs, squeezed)
    targets: (T,) = y[1:]
    """
    T = int(outputs.shape[0])
    assert targets.shape[0] == T and T >= 1
    rows_per_tile = max(8, (rows_per_tile // 8) * 8)  # sublane-aligned tile rows

    rows = pl.cdiv(T, _LANES)

    if rows <= rows_per_tile:
        # Common case: one gridless invocation, one input DMA, scalar SMEM output.
        packed = jnp.stack([_pack_dense(outputs, rows), _pack_dense(targets, rows)])
        loss = pl.pallas_call(
            _mse_loss_kernel,
            out_shape=jax.ShapeDtypeStruct((1, 1), jnp.float32),
            in_specs=[pl.BlockSpec(memory_space=pltpu.MemorySpace.VMEM)],
            out_specs=pl.BlockSpec(memory_space=pltpu.MemorySpace.SMEM),
        )(packed)
    else:
        # Long rollout: tile the row dimension, accumulate across the grid.
        rows = pl.cdiv(rows, rows_per_tile) * rows_per_tile
        num_tiles = rows // rows_per_tile
        packed = jnp.stack([_pack_dense(outputs, rows), _pack_dense(targets, rows)])
        loss = pl.pallas_call(
            _mse_loss_kernel_tiled,
            out_shape=jax.ShapeDtypeStruct((1, 1), jnp.float32),
            grid=(num_tiles,),
            in_specs=[pl.BlockSpec((2, rows_per_tile, _LANES), lambda i: (0, i, 0))],
            out_specs=pl.BlockSpec(memory_space=pltpu.MemorySpace.SMEM),
            scratch_shapes=[pltpu.VMEM((1, 1), jnp.float32)],
            compiler_params=pltpu.CompilerParams(
                dimension_semantics=("arbitrary",)),
        )(packed)

    return loss[0, 0]


if __name__ == "__main__":
    key = jax.random.PRNGKey(0)
    k_y, k_out = jax.random.split(key)

    # Small sequence consistent with mytrain(): y has length T+1, giving T steps.
    T = 8
    y = jax.random.normal(k_y, (T + 1,), dtype=jnp.float32)

    # Glue mirroring mytrain(): train_input = y[:-1].view(-1,1,1), train_target = y[1:]
    train_input = y[:-1].reshape(-1, 1, 1)   # (T, 1, 1) — kept for shape fidelity
    train_target = y[1:]                     # (T,)

    # Synthetic per-step outputs standing in for the abstract recurrent forward().
    outputs = train_input[:, 0, 0] + 0.1 * jax.random.normal(k_out, (T,), jnp.float32)

    loss = mse_rollout_loss(outputs, train_target)
    jax.block_until_ready(loss)
    ref = jnp.sum((outputs - train_target) ** 2)
    assert jnp.allclose(loss, ref, rtol=1e-5, atol=1e-5), (loss, ref)

    # Second check: long rollout crossing the 128-lane boundary, forced onto the
    # tiled grid path (17 valid rows -> padded to 24 -> 3 tiles of 8 rows).
    T2 = 2100
    k2a, k2b = jax.random.split(jax.random.PRNGKey(1))
    o2 = jax.random.normal(k2a, (T2,), jnp.float32)
    t2 = jax.random.normal(k2b, (T2,), jnp.float32)
    loss2 = mse_rollout_loss(o2, t2, rows_per_tile=8)
    jax.block_until_ready(loss2)
    ref2 = jnp.sum((o2 - t2) ** 2)
    assert jnp.allclose(loss2, ref2, rtol=1e-4, atol=1e-4), (loss2, ref2)

    print("KERNEL_OK")
</pallas_src>

<mosaic_0001>
module attributes {stable_mosaic.version = 11 : i64} {
  func.func @_mse_loss_kernel(%arg0: memref<2x1x128xf32, #tpu.memory_space<vmem>>, %arg1: memref<1x1xf32, #tpu.memory_space<smem>>) attributes {dimension_semantics = [], scalar_prefetch = 0 : i64, scratch_operands = 0 : i64, tpu.core_type = #tpu.core_type<tc>} {
    %c0 = arith.constant 0 : index
    %c0_0 = arith.constant 0 : index
    %c0_1 = arith.constant 0 : index
    %0 = vector.load %arg0[%c0, %c0_0, %c0_1] : memref<2x1x128xf32, #tpu.memory_space<vmem>>, vector<1x1x128xf32>
    %1 = vector.shape_cast %0 : vector<1x1x128xf32> to vector<1x128xf32>
    %c1 = arith.constant 1 : index
    %c0_2 = arith.constant 0 : index
    %c0_3 = arith.constant 0 : index
    %2 = vector.load %arg0[%c1, %c0_2, %c0_3] : memref<2x1x128xf32, #tpu.memory_space<vmem>>, vector<1x1x128xf32>
    %3 = vector.shape_cast %2 : vector<1x1x128xf32> to vector<1x128xf32>
    %4 = arith.subf %1, %3 : vector<1x128xf32>
    %5 = arith.mulf %4, %4 : vector<1x128xf32>
    %cst = arith.constant dense<0.000000e+00> : vector<1xf32>
    %6 = vector.multi_reduction <add>, %5, %cst [1] : vector<1x128xf32> to vector<1xf32>
    %7 = vector.shape_cast %6 : vector<1xf32> to vector<1x1xf32>
    %cst_4 = arith.constant dense<0.000000e+00> : vector<1xf32>
    %8 = vector.multi_reduction <add>, %7, %cst_4 [0] : vector<1x1xf32> to vector<1xf32>
    %9 = vector.shape_cast %8 : vector<1xf32> to vector<1x1xf32>
    %10 = vector.extract %9[0, 0] : f32 from vector<1x1xf32>
    %c0_5 = arith.constant 0 : index
    %c0_6 = arith.constant 0 : index
    %11 = memref.load %arg1[%c0_5, %c0_6] : memref<1x1xf32, #tpu.memory_space<smem>>
    memref.store %10, %arg1[%c0_5, %c0_6] : memref<1x1xf32, #tpu.memory_space<smem>>
    return
  }
}

</mosaic_0001>

<bundles_post_ra>
// kernel: tpu_custom_call.1
= control target key start
LH: loop header
LB: loop body
LE: loop exit
PB: predicated region body
PF: predicated region fallthrough
CT: control target
= control target key end

     0   :  { %6 = vsyncpa [#allocation3], 0  ;;  %s108_s0 = inlined_call_operand.hbm [shape: f32[2,1,128], index: 0, kind: input, shape index: {}]   ;;  %s109_s1 = inlined_call_operand.hbm [shape: f32[1,1], index: 1, kind: output, shape index: {}]  }
   0x1   :  { %7 = vsyncpa [#allocation4], 0  ;;  %s88_s6 = smov [#allocation2]  }
   0x2   :  { %s13_s7 = sshll.u32 %s88_s6, 4  ;;  %s14_s7 = int_to_ptr.vmem [resolvable:$true] %s13_s7 }
   0x3   :  { %s64_s8 = scalar_lea.vmem %s14_s7, 32  ;;  %p69_p1 = scmp.lt.s32.totalorder %s14_s7, %s14_s7 }
   0x4   :  { %p65_p0 = scmp.ne.s32.totalorder %s14_s7, %s64_s8  ;;  %p70_p2 = scmp.lt.s32.totalorder %s64_s8, %s64_s8 }
   0x6   :  { %p71_p3 = por %p70_p2, %p69_p1 }
   0x8   :  { %p72_p4 = pnand %p71_p3, %p65_p0 }
   0xa   :  { %75 = shalt.err (!%p72_p4)
}
   0xb   :  { %s89_s9 = smov 16   ;;  %s90_s10 = smov 1  }
   0xc   :  { %19 = dma.hbm_to_vmem [thread:$0]  %s108_s0, 32, %s14_s7, [#allocation3], %s89_s9, %s89_s9, %s90_s10  }
   0xd   :  { %84 = dma.done.wait [#allocation3], 32  }
   0xe   :  { %85 = vsyncadd [#allocation3], 4294967264  ;;  %v23_v0 = vld [vmem:[#allocation2] sm:$0x1]  ;;  %v25_v1 = vld [vmem:[#allocation2 + $0x1] sm:$0x1] }
   0xf   :  { %v26_v2 = vsub.f32 %v23_v0, %v25_v1  ;;  %vm28_vm0 = vcmask 1040384   ;;  %s91_s14 = smov [#allocation5]  }
  0x11   :  { %v27_v3 = vmul.f32 %v26_v2, %v26_v2 }
  0x13   :  { %v29_v4 = vsel %vm28_vm0, %v27_v3, 0.0 }
  0x14   :  { %30 = vadd.xlane.f32.xlu0 %v29_v4 }
  0x9d   :  { %v31_v5 = vpop.xlane.xlu0 %30 }
  0x9e   :  { %50 = vpush %v31_v5 }
  0xcf   :  { %s51_s13 = spop %50 }
  0xd0   :  { %35 = sst [smem:[#allocation5]] %s51_s13 }
  0xd1   :  { %43 = dma.smem_to_hbm %s91_s14, 16, %s109_s1, [#allocation4]  }
  0xd2   :  { %86 = dma.done.wait [#allocation4], 16  }
  0xd3   :  { %87 = vsyncadd [#allocation4], 4294967280 }
  0xd4   :  { %47 = sfence }
  0xd5   :  { %48 = vsyncpa [#allocation3], 1 }
  0xd6   :  { %49 = vsyncpa [#allocation4], 1 }

</bundles_post_ra>
